<compile_context>
chip_gen: v7x
topology: tpu7x:2x2x1
jax: 0.10.0
libtpu: 0.0.40
codegen_flags: <defaults>
</compile_context>

<pallas_src>
import functools

import jax
import jax.numpy as jnp
from jax.experimental import pallas as pl
from jax.experimental.pallas import tpu as pltpu


def _focal_elementwise(x, y, gamma, use_sigmoid):
    """Per-element focal term for a (TB, C, TS) tile (class axis = 1)."""
    x = x.astype(jnp.float32)
    y = y.astype(jnp.float32)
    if use_sigmoid:
        # numerically stable log-sigmoid / sigmoid
        log_p = jnp.minimum(x, 0.0) - jnp.log(1.0 + jnp.exp(-jnp.abs(x)))
        p = jnp.exp(log_p)
    else:
        m = jnp.max(x, axis=1, keepdims=True)
        z = x - m
        e = jnp.exp(z)
        se = jnp.sum(e, axis=1, keepdims=True)
        log_p = z - jnp.log(se)
        p = e / se
    bce = -(log_p * y)
    t = 1.0 - y * p
    if gamma == 2.0:
        fw = t * t
    elif gamma == 1.0:
        fw = t
    elif gamma == 0.0:
        fw = jnp.ones_like(t)
    else:
        fw = t ** gamma
    return fw * bce


def _focal_kernel_scaled(scale_ref, x_ref, y_ref, out_ref, acc_ref, *,
                         gamma, use_sigmoid):
    """Weighted path: scale_ref holds w_b * cw_c / (B*S), shape (TB, C, 1)."""
    si = pl.program_id(1)

    @pl.when(si == 0)
    def _():
        acc_ref[...] = jnp.zeros_like(acc_ref)

    elem = _focal_elementwise(x_ref[...], y_ref[...], gamma, use_sigmoid)
    per_class = jnp.sum(elem, axis=-1, keepdims=True)        # (TB, C, 1)
    acc_ref[...] += jnp.sum(per_class * scale_ref[...])      # scalar, broadcasts

    @pl.when(si == pl.num_programs(1) - 1)
    def _():
        out_ref[...] = acc_ref[...]


def _focal_kernel_plain(x_ref, y_ref, out_ref, acc_ref, *, gamma, use_sigmoid):
    """Unweighted path: flat sum; 1/(B*S) is applied once in the wrapper."""
    si = pl.program_id(1)

    @pl.when(si == 0)
    def _():
        acc_ref[...] = jnp.zeros_like(acc_ref)

    elem = _focal_elementwise(x_ref[...], y_ref[...], gamma, use_sigmoid)
    acc_ref[...] += jnp.sum(elem)                            # scalar, broadcasts

    @pl.when(si == pl.num_programs(1) - 1)
    def _():
        out_ref[...] = acc_ref[...]


def focal_loss(logit, y_true, weight=None, *, sigmoid=False, gamma=2.0,
               class_weights=None, frequency_weighting=False):
    """JAX/Pallas equivalent of FocalLoss.forward."""
    if logit.shape != y_true.shape:
        raise ValueError("Shape of predicted and true labels does not match.")

    B, C = logit.shape[0], logit.shape[1]
    S = 1
    for d in logit.shape[2:]:
        S *= d
    use_sigmoid = bool(sigmoid) or (C == 1)

    x = logit.reshape(B, C, S)
    y = y_true.reshape(B, C, S)

    # ---- weights -----------------------------------------------------------
    if frequency_weighting:
        if weight is None:
            raise ValueError("No instance weights were given as input argument.")
        w = jnp.asarray(weight, jnp.float32)
        if w.shape != (B,):
            raise ValueError("Number of instances and instance weights do not match.")
    else:
        w = None
    if class_weights is not None:
        cw = jnp.asarray(class_weights, jnp.float32)
        if cw.shape != (C,):
            raise ValueError("Number of class channels and class weights do not match.")
    else:
        cw = None
    has_scale = (w is not None) or (cw is not None)

    # ---- tiling --------------------------------------------------------------
    LANE = 128
    TB = min(B, 8)
    # ~2 MiB (f32) per input per pipeline buffer -> safe on v5e/v6e and v7x's
    # smaller 64 MiB VMEM, and big enough to amortize per-step grid overhead.
    target_tile_bytes = 2 * 1024 * 1024
    ts_cap = max(LANE, (target_tile_bytes // (TB * C * 4)) // LANE * LANE)
    TS = min(ts_cap, pl.cdiv(S, LANE) * LANE)
    NB = pl.cdiv(B, TB)
    NS = pl.cdiv(S, TS)
    B_pad, S_pad = NB * TB, NS * TS

    # Zero padding contributes exactly zero loss (y_true = 0 -> bce = 0).
    if B_pad != B or S_pad != S:
        pad = ((0, B_pad - B), (0, 0), (0, S_pad - S))
        x = jnp.pad(x, pad)
        y = jnp.pad(y, pad)

    grid = (NB, NS)
    data_spec = pl.BlockSpec((TB, C, TS), lambda bi, si: (bi, 0, si))
    out_spec = pl.BlockSpec((1, 1, 1), lambda bi, si: (bi, 0, 0))
    out_shape = jax.ShapeDtypeStruct((NB, 1, 1), jnp.float32)
    scratch_shapes = [pltpu.VMEM((1, 1, 1), jnp.float32)]
    cparams = pltpu.CompilerParams(
        dimension_semantics=("parallel", "arbitrary"),
        vmem_limit_bytes=32 * 1024 * 1024)

    if has_scale:
        wv = w if w is not None else jnp.ones((B,), jnp.float32)
        cv = cw if cw is not None else jnp.ones((C,), jnp.float32)
        # Fold batch-mean, spatial-mean, instance weights and class weights
        # into one per-(b, c) scale so the kernel is a flat weighted sum.
        scale = (wv[:, None] * cv[None, :]) / float(B * S)    # (B, C)
        scale = scale.reshape(B, C, 1)
        if B_pad != B:
            scale = jnp.pad(scale, ((0, B_pad - B), (0, 0), (0, 0)))
        kernel = functools.partial(_focal_kernel_scaled,
                                   gamma=float(gamma), use_sigmoid=use_sigmoid)
        partials = pl.pallas_call(
            kernel,
            grid=grid,
            in_specs=[pl.BlockSpec((TB, C, 1), lambda bi, si: (bi, 0, 0)),
                      data_spec, data_spec],
            out_specs=out_spec,
            out_shape=out_shape,
            scratch_shapes=scratch_shapes,
            compiler_params=cparams,
        )(scale, x, y)
        return jnp.sum(partials)

    # Statically specialized unweighted path: no scale array input, no extra
    # multiply in the hot loop; the constant 1/(B*S) is applied once at the end.
    kernel = functools.partial(_focal_kernel_plain,
                               gamma=float(gamma), use_sigmoid=use_sigmoid)
    partials = pl.pallas_call(
        kernel,
        grid=grid,
        in_specs=[data_spec, data_spec],
        out_specs=out_spec,
        out_shape=out_shape,
        scratch_shapes=scratch_shapes,
        compiler_params=cparams,
    )(x, y)
    return jnp.sum(partials) / float(B * S)


def _reference(logit, y_true, weight=None, *, sigmoid=False, gamma=2.0,
               class_weights=None, frequency_weighting=False):
    """Plain-JAX translation of the PyTorch FocalLoss.forward."""
    B, C = logit.shape[0], logit.shape[1]
    if sigmoid or C == 1:
        y_pred = jax.nn.sigmoid(logit)
        log_y_pred = jax.nn.log_sigmoid(logit)
    else:
        y_pred = jax.nn.softmax(logit, axis=1)
        log_y_pred = jax.nn.log_softmax(logit, axis=1)
    yt = y_true.reshape(B, C, -1).astype(jnp.float32)
    yp = y_pred.reshape(B, C, -1).astype(jnp.float32)
    lyp = log_y_pred.reshape(B, C, -1).astype(jnp.float32)
    bce = -(lyp * yt)
    fw = (1.0 - yt * yp) ** gamma
    per_class = jnp.mean(fw * bce, axis=-1)
    if class_weights is not None:
        per_class = per_class * jnp.asarray(class_weights, jnp.float32)[None, :]
    inst = jnp.sum(per_class, axis=1)
    if frequency_weighting:
        inst = inst * weight
    return jnp.mean(inst)


if __name__ == "__main__":
    key = jax.random.PRNGKey(0)
    k1, k2, k3, k4 = jax.random.split(key, 4)

    B, C, X, Y = 2, 4, 16, 16
    logit = jax.random.normal(k1, (B, C, X, Y), dtype=jnp.float32)
    # Soft labels in [0, 1] summing to 1 over the class axis.
    y_true = jax.nn.softmax(
        4.0 * jax.random.normal(k2, (B, C, X, Y), dtype=jnp.float32), axis=1)
    weight = jax.random.uniform(k3, (B,), dtype=jnp.float32) + 0.5
    class_w = jax.random.uniform(k4, (C,), dtype=jnp.float32) + 0.5

    # Case 1: softmax path, no weighting (statically specialized kernel).
    out = jax.block_until_ready(focal_loss(logit, y_true))
    ref = _reference(logit, y_true)
    assert jnp.allclose(out, ref, rtol=1e-5, atol=1e-6), (out, ref)

    # Case 2: softmax path with class weights + frequency weighting.
    out_w = jax.block_until_ready(
        focal_loss(logit, y_true, weight, class_weights=class_w,
                   frequency_weighting=True))
    ref_w = _reference(logit, y_true, weight, class_weights=class_w,
                       frequency_weighting=True)
    assert jnp.allclose(out_w, ref_w, rtol=1e-5, atol=1e-6), (out_w, ref_w)

    # Case 3: sigmoid path (also used when C == 1).
    out_s = jax.block_until_ready(focal_loss(logit, y_true, sigmoid=True))
    ref_s = _reference(logit, y_true, sigmoid=True)
    assert jnp.allclose(out_s, ref_s, rtol=1e-5, atol=1e-6), (out_s, ref_s)

    print("KERNEL_OK")
</pallas_src>

<mosaic_0001>
module attributes {stable_mosaic.version = 11 : i64} {
  func.func @_focal_kernel_plain(%arg0: i32, %arg1: i32, %arg2: memref<2x4x256xf32, #tpu.memory_space<vmem>>, %arg3: memref<2x4x256xf32, #tpu.memory_space<vmem>>, %arg4: memref<1x1x1xf32, #tpu.memory_space<vmem>>, %arg5: memref<1x1x1xf32, #tpu.memory_space<vmem>>) attributes {dimension_semantics = [#tpu.dimension_semantics<parallel>, #tpu.dimension_semantics<arbitrary>], iteration_bounds = array<i64: 1, 1>, scalar_prefetch = 0 : i64, scratch_operands = 1 : i64, tpu.core_type = #tpu.core_type<tc>, window_params = [{transform_indices = @transform_0, window_bounds = array<i64: 2, 4, 256>}, {transform_indices = @transform_1, window_bounds = array<i64: 2, 4, 256>}, {transform_indices = @transform_2, window_bounds = array<i64: 1, 1, 1>}]} {
    %c0_i32 = arith.constant 0 : i32
    %0 = arith.cmpi eq, %arg1, %c0_i32 : i32
    %1 = arith.extui %0 : i1 to i32
    %c0_i32_0 = arith.constant 0 : i32
    %2 = arith.cmpi ne, %1, %c0_i32_0 : i32
    scf.if %2 {
      %cst_18 = arith.constant 0.000000e+00 : f32
      %36 = vector.broadcast %cst_18 : f32 to vector<1x1x1xf32>
      %c0_19 = arith.constant 0 : index
      %c0_20 = arith.constant 0 : index
      %c0_21 = arith.constant 0 : index
      %37 = vector.load %arg5[%c0_19, %c0_20, %c0_21] : memref<1x1x1xf32, #tpu.memory_space<vmem>>, vector<1x1x1xf32>
      tpu.vector_store %arg5[%c0_19, %c0_20, %c0_21], %36 {strides = array<i32>} : memref<1x1x1xf32, #tpu.memory_space<vmem>>, vector<1x1x1xf32>,
    } else {
    }
    %c0 = arith.constant 0 : index
    %c0_1 = arith.constant 0 : index
    %c0_2 = arith.constant 0 : index
    %3 = vector.load %arg2[%c0, %c0_1, %c0_2] : memref<2x4x256xf32, #tpu.memory_space<vmem>>, vector<2x4x256xf32>
    %c0_3 = arith.constant 0 : index
    %c0_4 = arith.constant 0 : index
    %c0_5 = arith.constant 0 : index
    %4 = vector.load %arg3[%c0_3, %c0_4, %c0_5] : memref<2x4x256xf32, #tpu.memory_space<vmem>>, vector<2x4x256xf32>
    %cst = arith.constant dense<0xFF800000> : vector<2x256xf32>
    %5 = vector.multi_reduction <maximumf>, %3, %cst [1] : vector<2x4x256xf32> to vector<2x256xf32>
    %6 = vector.shape_cast %5 : vector<2x256xf32> to vector<2x1x256xf32>
    %7 = vector.broadcast %6 : vector<2x1x256xf32> to vector<2x4x256xf32>
    %8 = arith.subf %3, %7 : vector<2x4x256xf32>
    %9 = math.exp %8 : vector<2x4x256xf32>
    %cst_6 = arith.constant dense<0.000000e+00> : vector<2x256xf32>
    %10 = vector.multi_reduction <add>, %9, %cst_6 [1] : vector<2x4x256xf32> to vector<2x256xf32>
    %11 = vector.shape_cast %10 : vector<2x256xf32> to vector<2x1x256xf32>
    %12 = math.log %11 : vector<2x1x256xf32>
    %13 = vector.broadcast %12 : vector<2x1x256xf32> to vector<2x4x256xf32>
    %14 = arith.subf %8, %13 : vector<2x4x256xf32>
    %15 = vector.broadcast %11 : vector<2x1x256xf32> to vector<2x4x256xf32>
    %16 = arith.divf %9, %15 : vector<2x4x256xf32>
    %17 = arith.mulf %14, %4 : vector<2x4x256xf32>
    %cst_7 = arith.constant 0.000000e+00 : f32
    %18 = vector.broadcast %cst_7 : f32 to vector<2x4x256xf32>
    %19 = arith.subf %18, %17 : vector<2x4x256xf32>
    %20 = arith.mulf %4, %16 : vector<2x4x256xf32>
    %cst_8 = arith.constant 1.000000e+00 : f32
    %21 = vector.broadcast %cst_8 : f32 to vector<2x4x256xf32>
    %22 = arith.subf %21, %20 : vector<2x4x256xf32>
    %23 = arith.mulf %22, %22 : vector<2x4x256xf32>
    %24 = arith.mulf %23, %19 : vector<2x4x256xf32>
    %c0_9 = arith.constant 0 : index
    %c0_10 = arith.constant 0 : index
    %c0_11 = arith.constant 0 : index
    %25 = vector.load %arg5[%c0_9, %c0_10, %c0_11] : memref<1x1x1xf32, #tpu.memory_space<vmem>>, vector<1x1x1xf32>
    %26 = vector.shape_cast %24 : vector<2x4x256xf32> to vector<1x2x4x256xf32>
    %cst_12 = arith.constant dense<0.000000e+00> : vector<1xf32>
    %27 = vector.multi_reduction <add>, %26, %cst_12 [1, 2, 3] : vector<1x2x4x256xf32> to vector<1xf32>
    %28 = vector.shape_cast %27 : vector<1xf32> to vector<1x1x1x1xf32>
    %29 = vector.extract %28[0, 0, 0, 0] : f32 from vector<1x1x1x1xf32>
    %30 = vector.broadcast %29 : f32 to vector<1x1x1xf32>
    %31 = arith.addf %25, %30 : vector<1x1x1xf32>
    %c0_13 = arith.constant 0 : index
    %c0_14 = arith.constant 0 : index
    %c0_15 = arith.constant 0 : index
    %32 = vector.load %arg5[%c0_13, %c0_14, %c0_15] : memref<1x1x1xf32, #tpu.memory_space<vmem>>, vector<1x1x1xf32>
    tpu.vector_store %arg5[%c0_13, %c0_14, %c0_15], %31 {strides = array<i32>} : memref<1x1x1xf32, #tpu.memory_space<vmem>>, vector<1x1x1xf32>,
    %c0_i32_16 = arith.constant 0 : i32
    %33 = arith.cmpi eq, %arg1, %c0_i32_16 : i32
    %34 = arith.extui %33 : i1 to i32
    %c0_i32_17 = arith.constant 0 : i32
    %35 = arith.cmpi ne, %34, %c0_i32_17 : i32
    scf.if %35 {
      %c0_18 = arith.constant 0 : index
      %c0_19 = arith.constant 0 : index
      %c0_20 = arith.constant 0 : index
      %36 = vector.load %arg5[%c0_18, %c0_19, %c0_20] : memref<1x1x1xf32, #tpu.memory_space<vmem>>, vector<1x1x1xf32>
      %c0_21 = arith.constant 0 : index
      %c0_22 = arith.constant 0 : index
      %c0_23 = arith.constant 0 : index
      %37 = vector.load %arg4[%c0_21, %c0_22, %c0_23] : memref<1x1x1xf32, #tpu.memory_space<vmem>>, vector<1x1x1xf32>
      tpu.vector_store %arg4[%c0_21, %c0_22, %c0_23], %36 {strides = array<i32>} : memref<1x1x1xf32, #tpu.memory_space<vmem>>, vector<1x1x1xf32>,
    } else {
    }
    return
  }
  func.func @transform_0(%arg0: i32, %arg1: i32) -> (i32, i32, i32) {
    %c0_i32 = arith.constant 0 : i32
    %c0_i32_0 = arith.constant 0 : i32
    return %arg0, %c0_i32, %arg1 : i32, i32, i32
  }
  func.func @transform_1(%arg0: i32, %arg1: i32) -> (i32, i32, i32) {
    %c0_i32 = arith.constant 0 : i32
    %c0_i32_0 = arith.constant 0 : i32
    return %arg0, %c0_i32, %arg1 : i32, i32, i32
  }
  func.func @transform_2(%arg0: i32, %arg1: i32) -> (i32, i32, i32) {
    %c0_i32 = arith.constant 0 : i32
    %c0_i32_0 = arith.constant 0 : i32
    %c0_i32_1 = arith.constant 0 : i32
    return %arg0, %c0_i32, %c0_i32_0 : i32, i32, i32
  }
}

</mosaic_0001>

<bundles_post_ra>
// kernel: tpu_custom_call.1
= control target key start
LH: loop header
LB: loop body
LE: loop exit
PB: predicated region body
PF: predicated region fallthrough
CT: control target
= control target key end

     0   :  { %7 = vsyncpa [#allocation4], 0  ;;  %s397_s0 = inlined_call_operand.hbm [shape: f32[2,4,256], index: 0, kind: input, shape index: {}]   ;;  %s398_s1 = inlined_call_operand.hbm [shape: f32[2,4,256], index: 1, kind: input, shape index: {}]   ;;  %s399_s2 = inlined_call_operand.hbm [shape: f32[1,1,1], index: 2, kind: output, shape index: {}]  }
   0x1   :  { %8 = vsyncpa [#allocation7], 0 }
   0x2   :  { %9 = vsyncpa [#allocation5], 0  ;;  %s321_s9 = smov [#allocation3]   ;;  %s249_s13 = scalar_lea.hbm %s397_s0, 256 }
   0x3   :  { %s15_s10 = sshll.u32 %s321_s9, 4  ;;  %p250_p0 = scmp.ne.s32.totalorder %s397_s0, %s249_s13  ;;  %s16_s10 = int_to_ptr.vmem [resolvable:$true] %s15_s10 }
   0x4   :  { %p253_p1 = scmp.lt.u32.totalorder %s249_s13, %s397_s0 }
   0x6   :  { %p255_p2 = pnand %p253_p1, %p250_p0 }
   0x8   :  { %258 = shalt.err (!%p255_p2)
}
   0x9   :  { %s259_s18 = scalar_lea.vmem %s16_s10, 256  ;;  %p264_p4 = scmp.lt.s32.totalorder %s16_s10, %s16_s10 }
   0xa   :  { %p260_p3 = scmp.ne.s32.totalorder %s16_s10, %s259_s18  ;;  %p265_p5 = scmp.lt.s32.totalorder %s259_s18, %s259_s18 }
   0xc   :  { %p266_p6 = por %p265_p5, %p264_p4 }
   0xe   :  { %p267_p7 = pnand %p266_p6, %p260_p3 }
  0x10   :  { %270 = shalt.err (!%p267_p7)
}
  0x11   :  { %s322_s19 = smov 128   ;;  %s323_s20 = smov 8  }
  0x12   :  { %21 = dma.hbm_to_vmem [thread:$0]  %s397_s0, 256, %s16_s10, [#allocation4], %s322_s19, %s322_s19, %s323_s20  }
  0x13   :  { %s324_s23 = smov [#allocation6]   ;;  %s271_s27 = scalar_lea.hbm %s398_s1, 256 }
  0x14   :  { %s27_s24 = sshll.u32 %s324_s23, 4  ;;  %p272_p8 = scmp.ne.s32.totalorder %s398_s1, %s271_s27  ;;  %s28_s24 = int_to_ptr.vmem [resolvable:$true] %s27_s24 }
  0x15   :  { %p275_p9 = scmp.lt.u32.totalorder %s271_s27, %s398_s1 }
  0x17   :  { %p277_p10 = pnand %p275_p9, %p272_p8 }
  0x19   :  { %280 = shalt.err (!%p277_p10)
}
  0x1a   :  { %s281_s4 = scalar_lea.vmem %s28_s24, 256  ;;  %p286_p12 = scmp.lt.s32.totalorder %s28_s24, %s28_s24 }
  0x1b   :  { %p282_p11 = scmp.ne.s32.totalorder %s28_s24, %s281_s4  ;;  %p287_p13 = scmp.lt.s32.totalorder %s281_s4, %s281_s4 }
  0x1d   :  { %p288_p0 = por %p287_p13, %p286_p12 }
  0x1f   :  { %p289_p1 = pnand %p288_p0, %p282_p11 }
  0x21   :  { %292 = shalt.err (!%p289_p1)
}
  0x22   :  { %33 = dma.hbm_to_vmem [thread:$0]  %s398_s1, 256, %s28_s24, [#allocation7], %s322_s19, %s322_s19, %s323_s20  }
  0x23   :  { %315 = dma.done.wait [#allocation4], 256  }
  0x24   :  { %316 = vsyncadd [#allocation4], 4294967040 }
  0x25   :  { %317 = dma.done.wait [#allocation7], 256  }
  0x26   :  { %318 = vsyncadd [#allocation7], 4294967040  ;;  %vm56_vm0 = vcmask 1043456   ;;  %v46_v0 = vld [vmem:[#allocation3] sm:$0xff]  ;;  %v47_v1 = vld [vmem:[#allocation3 + $0x8] sm:$0xff]  ;;  %vm44_vm1 = vcmask 0  }
  0x27   :  { %v52_v2 = vcombine.high %v46_v0, %v46_v0  ;;  %v53_v3 = vcombine.high %v47_v1, %v47_v1  ;;  %v57_v4 = vsel %vm56_vm0, %v46_v0, -inf  ;;  %v71_v5 = vsel %vm56_vm0, %v47_v1, -inf  ;;  %s326_s6 = smov [#allocation8]  }
  0x28   :  { %v58_v6 = vrot.slane %v57_v4, 4  ;;  %v72_v7 = vrot.slane %v71_v5, 4  ;;  %s213_s7 = sshll.u32 %s326_s6, 4  ;;  %s214_s7 = int_to_ptr.vmem [resolvable:$true] %s213_s7 }
  0x29   :  { %v64_v8 = vsel %vm56_vm0, %v52_v2, -inf  ;;  %v78_v9 = vsel %vm56_vm0, %v53_v3, -inf  ;;  %s293_s8 = scalar_lea.vmem %s214_s7, 16  ;;  %s297_s9 = scalar_lea.vmem %s214_s7, 32 }
  0x2a   :  { %v59_v10 = vmax.f32 %v57_v4, %v58_v6  ;;  %v65_v11 = vrot.slane %v64_v8, 4  ;;  %v73_v12 = vmax.f32 %v71_v5, %v72_v7  ;;  %v79_v13 = vrot.slane %v78_v9, 4  ;;  %p294_p2 = scmp.ne.s32.totalorder %s214_s7, %s293_s8  ;;  %p298_p3 = scmp.lt.s32.totalorder %s214_s7, %s214_s7 }
  0x2b   :  { %p299_p4 = scmp.lt.s32.totalorder %s297_s9, %s293_s8 }
  0x2c   :  { %v60_v14 = vrot.slane %v59_v10, 2  ;;  %v66_v15 = vmax.f32 %v64_v8, %v65_v11  ;;  %v74_v16 = vrot.slane %v73_v12, 2  ;;  %v80_v17 = vmax.f32 %v78_v9, %v79_v13 }
  0x2d   :  { %p300_p5 = por %p299_p4, %p298_p3 }
  0x2e   :  { %v61_v18 = vmax.f32 %v59_v10, %v60_v14  ;;  %v67_v19 = vrot.slane %v66_v15, 2  ;;  %v75_v20 = vmax.f32 %v73_v12, %v74_v16  ;;  %v81_v21 = vrot.slane %v80_v17, 2  ;;  %v48_v16 = vld [vmem:[#allocation6] sm:$0xff] }
  0x2f   :  { %p301_p6 = pnand %p300_p5, %p294_p2 }
  0x30   :  { %v62_v22 = vrot.slane %v61_v18, 1  ;;  %v68_v23 = vmax.f32 %v66_v15, %v67_v19  ;;  %v76_v24 = vrot.slane %v75_v20, 1  ;;  %v82_v25 = vmax.f32 %v80_v17, %v81_v21  ;;  %v49_v19 = vld [vmem:[#allocation6 + $0x8] sm:$0xff] }
  0x32   :  { %v63_v26 = vmax.f32 %v61_v18, %v62_v22  ;;  %v69_v27 = vrot.slane %v68_v23, 1  ;;  %v77_v28 = vmax.f32 %v75_v20, %v76_v24  ;;  %v83_v29 = vrot.slane %v82_v25, 1 }
  0x34   :  { %v70_v30 = vmax.f32 %v68_v23, %v69_v27  ;;  %v84_v31 = vmax.f32 %v82_v25, %v83_v29 }
  0x36   :  { %v89_v32 = vcombine.low %v63_v26, %v70_v30  ;;  %v90_v33 = vcombine.low %v77_v28, %v84_v31 }
  0x38   :  { %v93_v34 = vsub.f32 %v46_v0, %v89_v32  ;;  %v370_v35 = vsub.f32 %v47_v1, %v90_v33 }
  0x3a   :  { %v95_v36 = vmul.f32 1.442695, %v93_v34  ;;  %v97_v37 = vmul.f32 1.442695, %v370_v35 }
  0x3c   :  { %233 = vpow2.f32 %v95_v36 }
  0x3d   :  { %235 = vpow2.f32 %v97_v37 }
  0x46   :  { %v234_v38 = vpop.eup %233 }
  0x47   :  { %v236_v39 = vpop.eup %235  ;;  %v101_v40 = vcombine.high %v234_v38, %v234_v38  ;;  %v105_v41 = vsel %vm56_vm0, %v234_v38, 0.0 }
  0x48   :  { %v102_v42 = vcombine.high %v236_v39, %v236_v39  ;;  %v106_v43 = vrot.slane %v105_v41, 4  ;;  %v119_v44 = vsel %vm56_vm0, %v236_v39, 0.0 }
  0x49   :  { %v112_v45 = vsel %vm56_vm0, %v101_v40, 0.0  ;;  %v120_v46 = vrot.slane %v119_v44, 4 }
  0x4a   :  { %v107_v47 = vadd.f32 %v106_v43, %v105_v41  ;;  %v113_v48 = vrot.slane %v112_v45, 4  ;;  %v126_v49 = vsel %vm56_vm0, %v102_v42, 0.0 }
  0x4b   :  { %v121_v50 = vadd.f32 %v120_v46, %v119_v44  ;;  %v127_v51 = vrot.slane %v126_v49, 4 }
  0x4c   :  { %v108_v52 = vrot.slane %v107_v47, 2  ;;  %v114_v53 = vadd.f32 %v113_v48, %v112_v45 }
  0x4d   :  { %v122_v54 = vrot.slane %v121_v50, 2  ;;  %v128_v55 = vadd.f32 %v127_v51, %v126_v49 }
  0x4e   :  { %v109_v56 = vadd.f32 %v108_v52, %v107_v47  ;;  %v115_v57 = vrot.slane %v114_v53, 2  ;;  %v325_v47 = vmov 0.0  }
  0x4f   :  { %v123_v58 = vadd.f32 %v122_v54, %v121_v50  ;;  %v129_v59 = vrot.slane %v128_v55, 2  ;;  %45 = vst.msk [vmem:[#allocation2] sm:$0x1] %vm44_vm1, %v325_v47 }
  0x50   :  { %v110_v60 = vrot.slane %v109_v56, 1  ;;  %v116_v61 = vadd.f32 %v115_v57, %v114_v53 }
  0x51   :  { %v124_v62 = vrot.slane %v123_v58, 1  ;;  %v130_v63 = vadd.f32 %v129_v59, %v128_v55 }
  0x52   :  { %v111_v0 = vadd.f32 %v110_v60, %v109_v56  ;;  %v117_v1 = vrot.slane %v116_v61, 1 }
  0x53   :  { %v125_v2 = vadd.f32 %v124_v62, %v123_v58  ;;  %v131_v3 = vrot.slane %v130_v63, 1 }
  0x54   :  { %v118_v4 = vadd.f32 %v117_v1, %v116_v61  ;;  %237 = vlog2.f32 %v111_v0 }
  0x55   :  { %v132_v5 = vadd.f32 %v131_v3, %v130_v63  ;;  %239 = vlog2.f32 %v125_v2 }
  0x56   :  { %241 = vlog2.f32 %v118_v4  ;;  %v155_v6 = vcombine.low %v111_v0, %v118_v4  ;;  %v175_v55 = vld [vmem:[#allocation2] sm:$0x1] }
  0x57   :  { %243 = vlog2.f32 %v132_v5  ;;  %v156_v7 = vcombine.low %v125_v2, %v132_v5 }
  0x58   :  { %245 = vrcp.f32 %v155_v6 }
  0x59   :  { %247 = vrcp.f32 %v156_v7 }
  0x5e   :  { %v238_v8 = vpop.eup %237 }
  0x5f   :  { %v240_v9 = vpop.eup %239  ;;  %v134_v10 = vmul.f32 0.6931472, %v238_v8 }
  0x60   :  { %v242_v11 = vpop.eup %241  ;;  %v138_v12 = vmul.f32 0.6931472, %v240_v9 }
  0x61   :  { %v244_v13 = vpop.eup %243  ;;  %v136_v14 = vmul.f32 0.6931472, %v242_v11 }
  0x62   :  { %v246_v15 = vpop.eup %245  ;;  %v140_v17 = vmul.f32 0.6931472, %v244_v13 }
  0x63   :  { %v248_v18 = vpop.eup %247  ;;  %v145_v20 = vcombine.low %v134_v10, %v136_v14  ;;  %v160_v21 = vmul.f32 %v246_v15, %v234_v38 }
  0x64   :  { %v146_v22 = vcombine.low %v138_v12, %v140_v17  ;;  %v162_v23 = vmul.f32 %v248_v18, %v236_v39 }
  0x65   :  { %v149_v24 = vsub.f32 %v93_v34, %v145_v20  ;;  %v167_v25 = vmul.f32 %v160_v21, %v48_v16 }
  0x66   :  { %v150_v26 = vsub.f32 %v370_v35, %v146_v22  ;;  %v168_v27 = vmul.f32 %v162_v23, %v49_v19 }
  0x67   :  { %v163_v28 = vmul.f32 %v149_v24, %v48_v16  ;;  %v169_v29 = vsub.f32 1.0, %v167_v25 }
  0x68   :  { %v164_v30 = vmul.f32 %v150_v26, %v49_v19  ;;  %v170_v31 = vsub.f32 1.0, %v168_v27 }
  0x69   :  { %v165_v32 = vsub.f32 0.0, %v163_v28  ;;  %v171_v33 = vmul.f32 %v169_v29, %v169_v29 }
  0x6a   :  { %v166_v36 = vsub.f32 0.0, %v164_v30  ;;  %v172_v37 = vmul.f32 %v170_v31, %v170_v31 }
  0x6b   :  { %v173_v40 = vmul.f32 %v171_v33, %v165_v32 }
  0x6c   :  { %v174_v41 = vmul.f32 %v172_v37, %v166_v36 }
  0x6d   :  { %v178_v42 = vcombine.high %v173_v40, %v173_v40  ;;  %v182_v38 = vsel %vm56_vm0, %v173_v40, 0.0 }
  0x6e   :  { %v179_v43 = vcombine.high %v174_v41, %v174_v41  ;;  %v185_v39 = vsel %vm56_vm0, %v174_v41, 0.0 }
  0x6f   :  { %v183_v34 = vsel %vm56_vm0, %v178_v42, 0.0 }
  0x70   :  { %v184_v35 = vadd.f32 %v183_v34, %v182_v38  ;;  %v187_v44 = vsel %vm56_vm0, %v179_v43, 0.0 }
  0x72   :  { %v186_v45 = vadd.f32 %v185_v39, %v184_v35 }
  0x74   :  { %v188_v46 = vadd.f32 %v187_v44, %v186_v45 }
  0x76   :  { %189 = vadd.xlane.f32.xlu0 %v188_v46 }
 0x103   :  { %v190_v48 = vpop.xlane.xlu0 %189 }
 0x104   :  { %v191_v49 = vrot.slane %v190_v48, 4 }
 0x106   :  { %v192_v50 = vadd.f32 %v191_v49, %v190_v48 }
 0x108   :  { %v193_v51 = vrot.slane %v192_v50, 2 }
 0x10a   :  { %v194_v52 = vadd.f32 %v193_v51, %v192_v50 }
 0x10c   :  { %v195_v53 = vrot.slane %v194_v52, 1 }
 0x10e   :  { %v196_v54 = vadd.f32 %v195_v53, %v194_v52 }
 0x110   :  { %223 = vpush %v196_v54 }
 0x141   :  { %s224_s1 = spop %223 }
 0x142   :  { %v198_v56 = vstv %s224_s1 }
 0x143   :  { %v199_v57 = vadd.f32 %v198_v56, %v175_v55 }
 0x145   :  { %201 = vst.msk [vmem:[#allocation2] sm:$0x1] %vm44_vm1, %v199_v57 }
 0x14c   :  { %v205_v58 = vld [vmem:[#allocation2] sm:$0x1] }
 0x14d   :  { %206 = vst.msk [vmem:[#allocation8] sm:$0x1] %vm44_vm1, %v205_v58 }
 0x14e   :  { %304 = shalt.err (!%p301_p6)
}
 0x14f   :  { %s305_s12 = scalar_lea.hbm %s399_s2, 16 }
 0x150   :  { %p306_p7 = scmp.ne.s32.totalorder %s399_s2, %s305_s12  ;;  %p309_p8 = scmp.lt.u32.totalorder %s305_s12, %s399_s2 }
 0x152   :  { %p311_p9 = pnand %p309_p8, %p306_p7 }
 0x154   :  { %314 = shalt.err (!%p311_p9)
}
 0x155   :  { %216 = dma.vmem_to_hbm [thread:$0]  %s214_s7, 16, %s399_s2, [#allocation5]  }
 0x156   :  { %319 = dma.done.wait [#allocation5], 16  }
 0x157   :  { %320 = vsyncadd [#allocation5], 4294967280 }
 0x158   :  { %220 = vsyncpa [#allocation4], 1 }
 0x159   :  { %221 = vsyncpa [#allocation7], 1 }
 0x15a   :  { %222 = vsyncpa [#allocation5], 1 }

</bundles_post_ra>
